<compile_context>
chip_gen: v7x
topology: tpu7x:2x2x1
jax: 0.10.0
libtpu: 0.0.40
codegen_flags: <defaults>
</compile_context>

<pallas_src>
import functools

import jax
import jax.numpy as jnp
import numpy as np
from jax.experimental import pallas as pl
from jax.experimental.pallas import tpu as pltpu


# ----------------------------- Pallas kernel --------------------------------
def _maf_fused_kernel(
    x_ref, c_ref,                       # (d, tb), (c, tb)   batch-on-lanes
    w0_ref, b0_ref,                     # (nb, 2h1, d+c), (nb, 2h1, 1)
    w1_ref, b1_ref,                     # (nb, 2h2, 2h1), (nb, 2h2, 1)
    w2_ref, b2_ref,                     # (nb, 2d, 2h2),  (nb, 2d, 1)
    u_ref, ld_ref,                      # (d, tb), (1, tb)
    xc_ref,                             # VMEM scratch (d+c, tb)
    *, num_blocks, input_dim, cond_dim,
):
    x = x_ref[...]                                            # (d, tb)
    # cond rows of the fused [x; cond] scratch: written once per grid step.
    xc_ref[pl.ds(input_dim, cond_dim), :] = c_ref[...]
    log_det = jnp.zeros((1, x.shape[1]), jnp.float32)         # per-sample sum

    # Static unroll: num_blocks is small.  Switch to lax.fori_loop with dynamic
    # w*_ref[blk] indexing if num_blocks grows (bounds live ranges).
    for blk in range(num_blocks):
        xc_ref[pl.ds(0, input_dim), :] = x                    # refresh x rows
        h = jnp.dot(w0_ref[blk], xc_ref[...],
                    preferred_element_type=jnp.float32)
        h = jnp.maximum(h + b0_ref[blk], 0.0)                 # (2h1, tb)
        h = jnp.maximum(
            jnp.dot(w1_ref[blk], h, preferred_element_type=jnp.float32)
            + b1_ref[blk], 0.0)                               # (2h2, tb)
        ms = (jnp.dot(w2_ref[blk], h, preferred_element_type=jnp.float32)
              + b2_ref[blk])                                  # (2d, tb)
        m = ms[:input_dim, :]
        log_s = ms[input_dim:, :]
        # (x - m) / exp(log_s)  ==  (x - m) * exp(-log_s)
        x = (x - m) * jnp.exp(-log_s)
        # Per-sample reduction rides the sublane axis (XLU) — padded lane
        # columns of the last tile stay isolated and are clipped on writeback.
        log_det = log_det + jnp.sum(log_s, axis=0, keepdims=True)

    u_ref[...] = x                                            # lane-dense store
    ld_ref[...] = log_det


def _default_tb(batch):
    """Lane-axis tiles must be a multiple of 128 unless they span the batch.
    Target MiB-class activation slabs and >=2 grid steps (pipelining + both
    v7x TensorCores)."""
    if batch < 256:
        return batch
    tb = min(4096, batch // 2)
    return max(128, (tb // 128) * 128)


def _vmem_limit_bytes(fused, d, c, tb):
    itemsize = 4
    w_bytes = sum(int(np.prod(v.shape)) for v in fused.values()) * itemsize
    # double-buffered streamed blocks: x, cond in; u, log_det out
    io_bytes = 2 * (d + c + d + 1) * tb * itemsize
    # largest live intermediates of one block + [x; cond] scratch
    h1_2 = fused["w0"].shape[1]
    h2_2 = fused["w1"].shape[1]
    act_bytes = (h1_2 + h2_2 + 2 * d + (d + c) + 2 * d) * tb * itemsize
    est = 2 * (w_bytes + io_bytes + act_bytes)
    # clamp: never below the 32 MiB default, never above v7x's 64 MiB physical
    return int(min(max(est, 32 * 1024 * 1024), 64 * 1024 * 1024))


def conditional_maf_forward(fused, x, cond, *, tb=None):
    """Pallas implementation of ConditionalMAF.forward(x, cond)."""
    batch, d = x.shape
    c = cond.shape[1]
    nb = fused["w0"].shape[0]

    if tb is None:
        tb = _default_tb(batch)
    if tb < batch:
        tb = max(128, (tb // 128) * 128)       # lane-axis tiling constraint
        if tb >= batch:
            tb = batch
    grid = (pl.cdiv(batch, tb),)

    kernel = functools.partial(
        _maf_fused_kernel, num_blocks=nb, input_dim=d, cond_dim=c)
    col = lambda i: (0, i)          # batch-tiled (features, batch) operands
    rep3 = lambda i: (0, 0, 0)      # replicated stacked weights

    # Transposed, batch-on-lanes operands (wrapper-side layout plumbing).
    x_t = x.T
    c_t = cond.T

    u_t, ld = pl.pallas_call(
        kernel,
        out_shape=(
            jax.ShapeDtypeStruct((d, batch), jnp.float32),
            jax.ShapeDtypeStruct((1, batch), jnp.float32),
        ),
        grid=grid,
        in_specs=[
            pl.BlockSpec((d, tb), col),
            pl.BlockSpec((c, tb), col),
            pl.BlockSpec(fused["w0"].shape, rep3),
            pl.BlockSpec(fused["b0"].shape, rep3),
            pl.BlockSpec(fused["w1"].shape, rep3),
            pl.BlockSpec(fused["b1"].shape, rep3),
            pl.BlockSpec(fused["w2"].shape, rep3),
            pl.BlockSpec(fused["b2"].shape, rep3),
        ],
        out_specs=[
            pl.BlockSpec((d, tb), col),
            pl.BlockSpec((1, tb), col),
        ],
        scratch_shapes=[pltpu.VMEM((d + c, tb), jnp.float32)],
        compiler_params=pltpu.CompilerParams(
            dimension_semantics=("parallel",),
            vmem_limit_bytes=_vmem_limit_bytes(fused, d, c, tb),
        ),
    )(
        x_t, c_t,
        fused["w0"], fused["b0"],
        fused["w1"], fused["b1"],
        fused["w2"], fused["b2"],
    )

    return u_t.T, ld[0]


# ------------------------- parameter construction ---------------------------
def _made_masks(order, hidden_dims):
    """Standard MADE masks. order: int array (D,), values in 1..D."""
    d = order.shape[0]
    degrees = [np.asarray(order)]
    for h in hidden_dims:
        degrees.append((np.arange(h) % max(1, d - 1)) + 1)
    masks = []
    for l in range(len(hidden_dims)):
        masks.append(
            (degrees[l + 1][None, :] >= degrees[l][:, None]).astype(np.float32)
        )
    # output mask: strict inequality
    masks.append((np.asarray(order)[None, :] > degrees[-1][:, None]).astype(np.float32))
    return masks  # [ (D,H1), (H1,H2), (H2,D) ]


def _init_linear(key, fan_in, fan_out):
    # PyTorch nn.Linear default: U(-1/sqrt(fan_in), 1/sqrt(fan_in))
    kw, kb = jax.random.split(key)
    bound = 1.0 / np.sqrt(fan_in)
    w = jax.random.uniform(kw, (fan_in, fan_out), jnp.float32, -bound, bound)
    b = jax.random.uniform(kb, (1, fan_out), jnp.float32, -bound, bound)
    return w, b


def _init_made(key, input_dim, hidden_dims, cond_dim, order):
    """Returns the 7 (mask-folded) parameter arrays of one ConditionalMADE."""
    h1, h2 = hidden_dims
    m0, m1, m2 = _made_masks(order, hidden_dims)
    k0, k1, k2 = jax.random.split(key, 3)

    w0, b0 = _init_linear(k0, input_dim + cond_dim, h1)
    wx0 = w0[:input_dim] * jnp.asarray(m0)     # masked x -> h1
    wc0 = w0[input_dim:]                       # cond -> h1 : unmasked
    w1, b1 = _init_linear(k1, h1, h2)
    w1 = w1 * jnp.asarray(m1)
    w2, b2 = _init_linear(k2, h2, input_dim)
    w2 = w2 * jnp.asarray(m2)
    return [wx0, wc0, b0, w1, b1, w2, b2]


def init_conditional_maf(key, input_dim, hidden_dims, num_blocks, cond_dim):
    blocks = []
    for i in range(num_blocks):
        reverse = (i % 2 == 0)
        order = (
            np.arange(input_dim, 0, -1) if reverse else np.arange(1, input_dim + 1)
        )
        kmean, kscale, key = jax.random.split(key, 3)
        blocks.append(
            dict(
                mean=_init_made(kmean, input_dim, hidden_dims, cond_dim, order),
                scale=_init_made(kscale, input_dim, hidden_dims, cond_dim, order),
            )
        )
    return blocks


def fuse_and_stack(blocks):
    """Fuse each block's mean|scale MADEs into one wider transposed MLP
    (block-diagonal W1/W2), stacked over blocks in application (reversed)
    order.  Weights stored (out_features, in_features) for batch-on-lanes."""
    w0, b0, w1, b1, w2, b2 = [], [], [], [], [], []
    for blk in reversed(blocks):        # MAF.forward walks blocks reversed
        mwx0, mwc0, mb0, mw1, mb1, mw2, mb2 = blk["mean"]
        swx0, swc0, sb0, sw1, sb1, sw2, sb2 = blk["scale"]
        h1, h2 = mw1.shape
        d = mw2.shape[1]

        # layer 0: [x; cond] -> 2h1, mean|scale fused on the output axis
        w0_m = jnp.concatenate([mwx0, mwc0], axis=0).T        # (h1, d+c)
        w0_s = jnp.concatenate([swx0, swc0], axis=0).T
        w0.append(jnp.concatenate([w0_m, w0_s], axis=0))      # (2h1, d+c)
        b0.append(jnp.concatenate([mb0, sb0], axis=1).T)      # (2h1, 1)

        # layers 1/2: block-diagonal keeps mean/scale independent.  NOTE: free
        # while 2h <= 128 (v5e) / 256 (v6e/v7x); beyond that split into 2 dots.
        z1 = jnp.zeros((h2, h1), jnp.float32)
        w1.append(jnp.concatenate([
            jnp.concatenate([mw1.T, z1], axis=1),
            jnp.concatenate([z1, sw1.T], axis=1)], axis=0))    # (2h2, 2h1)
        b1.append(jnp.concatenate([mb1, sb1], axis=1).T)       # (2h2, 1)

        z2 = jnp.zeros((d, h2), jnp.float32)
        w2.append(jnp.concatenate([
            jnp.concatenate([mw2.T, z2], axis=1),
            jnp.concatenate([z2, sw2.T], axis=1)], axis=0))    # (2d, 2h2)
        b2.append(jnp.concatenate([mb2, sb2], axis=1).T)       # (2d, 1)

    stack = lambda xs: jnp.stack(xs, axis=0)
    return dict(w0=stack(w0), b0=stack(b0), w1=stack(w1), b1=stack(b1),
                w2=stack(w2), b2=stack(b2))


# ------------------------------ reference -----------------------------------
def conditional_maf_forward_ref(blocks, x, cond):
    """Pure-JAX reference (same math as the PyTorch module) for validation."""
    def made(p, x, c):
        wx0, wc0, b0, w1, b1, w2, b2 = p
        h = jnp.maximum(x @ wx0 + c @ wc0 + b0, 0.0)
        h = jnp.maximum(h @ w1 + b1, 0.0)
        return h @ w2 + b2

    _x = x
    log_det = jnp.zeros_like(x)
    for blk in reversed(blocks):
        m = made(blk["mean"], _x, cond)
        log_s = made(blk["scale"], _x, cond)
        _x = (_x - m) / jnp.exp(log_s)
        log_det = log_det + log_s
    return _x, log_det.sum(-1)


# ----------------------------------- main ------------------------------------
if __name__ == "__main__":
    INPUT_DIM = 8
    HIDDEN_DIMS = [32, 32]
    NUM_BLOCKS = 3
    COND_DIM = 4
    BATCH = 16

    key = jax.random.PRNGKey(0)
    kx, kc, kp = jax.random.split(key, 3)
    x = jax.random.normal(kx, (BATCH, INPUT_DIM), jnp.float32)
    cond = jax.random.normal(kc, (BATCH, COND_DIM), jnp.float32)

    blocks = init_conditional_maf(kp, INPUT_DIM, HIDDEN_DIMS, NUM_BLOCKS, COND_DIM)
    fused = fuse_and_stack(blocks)

    # --- small demo shape: grid collapses to (1,) ---
    u, log_det = conditional_maf_forward(fused, x, cond)
    u, log_det = jax.block_until_ready((u, log_det))

    u_ref, log_det_ref = conditional_maf_forward_ref(blocks, x, cond)
    np.testing.assert_allclose(np.asarray(u), np.asarray(u_ref), rtol=1e-4, atol=1e-4)
    np.testing.assert_allclose(
        np.asarray(log_det), np.asarray(log_det_ref), rtol=1e-4, atol=1e-4
    )

    # --- exercise the tiled / multi-step-grid path (incl. padded last tile) ---
    BATCH2 = 300
    kx2, kc2 = jax.random.split(jax.random.PRNGKey(1))
    x2 = jax.random.normal(kx2, (BATCH2, INPUT_DIM), jnp.float32)
    cond2 = jax.random.normal(kc2, (BATCH2, COND_DIM), jnp.float32)
    u2, ld2 = conditional_maf_forward(fused, x2, cond2, tb=128)   # grid=(3,)
    u2, ld2 = jax.block_until_ready((u2, ld2))
    u2_ref, ld2_ref = conditional_maf_forward_ref(blocks, x2, cond2)
    np.testing.assert_allclose(np.asarray(u2), np.asarray(u2_ref), rtol=1e-4, atol=1e-4)
    np.testing.assert_allclose(np.asarray(ld2), np.asarray(ld2_ref), rtol=1e-4, atol=1e-4)

    print("KERNEL_OK")
</pallas_src>

<mosaic_0001>
module attributes {stable_mosaic.version = 11 : i64} {
  func.func @_maf_fused_kernel(%arg0: i32, %arg1: memref<8x16xf32, #tpu.memory_space<vmem>>, %arg2: memref<4x16xf32, #tpu.memory_space<vmem>>, %arg3: memref<3x64x12xf32, #tpu.memory_space<vmem>>, %arg4: memref<3x64x1xf32, #tpu.memory_space<vmem>>, %arg5: memref<3x64x64xf32, #tpu.memory_space<vmem>>, %arg6: memref<3x64x1xf32, #tpu.memory_space<vmem>>, %arg7: memref<3x16x64xf32, #tpu.memory_space<vmem>>, %arg8: memref<3x16x1xf32, #tpu.memory_space<vmem>>, %arg9: memref<8x16xf32, #tpu.memory_space<vmem>>, %arg10: memref<1x16xf32, #tpu.memory_space<vmem>>, %arg11: memref<12x16xf32, #tpu.memory_space<vmem>>) attributes {dimension_semantics = [#tpu.dimension_semantics<parallel>], iteration_bounds = array<i64: 1>, scalar_prefetch = 0 : i64, scratch_operands = 1 : i64, tpu.core_type = #tpu.core_type<tc>, window_params = [{transform_indices = @transform_0, window_bounds = array<i64: 8, 16>}, {transform_indices = @transform_1, window_bounds = array<i64: 4, 16>}, {pipeline_mode = #tpu.pipeline_mode<synchronous>, transform_indices = @transform_2, window_bounds = array<i64: 3, 64, 12>}, {pipeline_mode = #tpu.pipeline_mode<synchronous>, transform_indices = @transform_3, window_bounds = array<i64: 3, 64, 1>}, {pipeline_mode = #tpu.pipeline_mode<synchronous>, transform_indices = @transform_4, window_bounds = array<i64: 3, 64, 64>}, {pipeline_mode = #tpu.pipeline_mode<synchronous>, transform_indices = @transform_5, window_bounds = array<i64: 3, 64, 1>}, {pipeline_mode = #tpu.pipeline_mode<synchronous>, transform_indices = @transform_6, window_bounds = array<i64: 3, 16, 64>}, {pipeline_mode = #tpu.pipeline_mode<synchronous>, transform_indices = @transform_7, window_bounds = array<i64: 3, 16, 1>}, {transform_indices = @transform_8, window_bounds = array<i64: 8, 16>}, {transform_indices = @transform_9, window_bounds = array<i64: 1, 16>}]} {
    %c0 = arith.constant 0 : index
    %c0_0 = arith.constant 0 : index
    %0 = vector.load %arg1[%c0, %c0_0] : memref<8x16xf32, #tpu.memory_space<vmem>>, vector<8x16xf32>
    %c0_1 = arith.constant 0 : index
    %c0_2 = arith.constant 0 : index
    %1 = vector.load %arg2[%c0_1, %c0_2] : memref<4x16xf32, #tpu.memory_space<vmem>>, vector<4x16xf32>
    %c8 = arith.constant 8 : index
    %c0_3 = arith.constant 0 : index
    %2 = vector.load %arg11[%c8, %c0_3] : memref<12x16xf32, #tpu.memory_space<vmem>>, vector<4x16xf32>
    tpu.vector_store %arg11[%c8, %c0_3], %1 {strides = array<i32>} : memref<12x16xf32, #tpu.memory_space<vmem>>, vector<4x16xf32>,
    %cst = arith.constant 0.000000e+00 : f32
    %3 = vector.broadcast %cst : f32 to vector<1x16xf32>
    %c0_4 = arith.constant 0 : index
    %c0_5 = arith.constant 0 : index
    %4 = vector.load %arg11[%c0_4, %c0_5] : memref<12x16xf32, #tpu.memory_space<vmem>>, vector<8x16xf32>
    tpu.vector_store %arg11[%c0_4, %c0_5], %0 {strides = array<i32>} : memref<12x16xf32, #tpu.memory_space<vmem>>, vector<8x16xf32>,
    %c0_6 = arith.constant 0 : index
    %c0_7 = arith.constant 0 : index
    %c0_8 = arith.constant 0 : index
    %5 = vector.load %arg3[%c0_6, %c0_7, %c0_8] : memref<3x64x12xf32, #tpu.memory_space<vmem>>, vector<1x64x12xf32>
    %6 = vector.shape_cast %5 : vector<1x64x12xf32> to vector<64x12xf32>
    %c0_9 = arith.constant 0 : index
    %c0_10 = arith.constant 0 : index
    %7 = vector.load %arg11[%c0_9, %c0_10] : memref<12x16xf32, #tpu.memory_space<vmem>>, vector<12x16xf32>
    %cst_11 = arith.constant dense<0.000000e+00> : vector<64x16xf32>
    %8 = tpu.matmul %6, %7, %cst_11 {dimension_numbers = #tpu.dot_dimension_numbers<[1], [0], [0], [1], [0, 0, 1, 1], [], []>} : vector<64x12xf32>, vector<12x16xf32>, vector<64x16xf32> -> vector<64x16xf32>
    %c0_12 = arith.constant 0 : index
    %c0_13 = arith.constant 0 : index
    %c0_14 = arith.constant 0 : index
    %9 = vector.load %arg4[%c0_12, %c0_13, %c0_14] : memref<3x64x1xf32, #tpu.memory_space<vmem>>, vector<1x64x1xf32>
    %10 = vector.shape_cast %9 : vector<1x64x1xf32> to vector<64x1xf32>
    %11 = vector.broadcast %10 : vector<64x1xf32> to vector<64x16xf32>
    %12 = arith.addf %8, %11 : vector<64x16xf32>
    %cst_15 = arith.constant 0.000000e+00 : f32
    %13 = vector.broadcast %cst_15 : f32 to vector<64x16xf32>
    %14 = arith.maximumf %12, %13 : vector<64x16xf32>
    %c0_16 = arith.constant 0 : index
    %c0_17 = arith.constant 0 : index
    %c0_18 = arith.constant 0 : index
    %15 = vector.load %arg5[%c0_16, %c0_17, %c0_18] : memref<3x64x64xf32, #tpu.memory_space<vmem>>, vector<1x64x64xf32>
    %16 = vector.shape_cast %15 : vector<1x64x64xf32> to vector<64x64xf32>
    %cst_19 = arith.constant dense<0.000000e+00> : vector<64x16xf32>
    %17 = tpu.matmul %16, %14, %cst_19 {dimension_numbers = #tpu.dot_dimension_numbers<[1], [0], [0], [1], [0, 0, 1, 1], [], []>} : vector<64x64xf32>, vector<64x16xf32>, vector<64x16xf32> -> vector<64x16xf32>
    %c0_20 = arith.constant 0 : index
    %c0_21 = arith.constant 0 : index
    %c0_22 = arith.constant 0 : index
    %18 = vector.load %arg6[%c0_20, %c0_21, %c0_22] : memref<3x64x1xf32, #tpu.memory_space<vmem>>, vector<1x64x1xf32>
    %19 = vector.shape_cast %18 : vector<1x64x1xf32> to vector<64x1xf32>
    %20 = vector.broadcast %19 : vector<64x1xf32> to vector<64x16xf32>
    %21 = arith.addf %17, %20 : vector<64x16xf32>
    %cst_23 = arith.constant 0.000000e+00 : f32
    %22 = vector.broadcast %cst_23 : f32 to vector<64x16xf32>
    %23 = arith.maximumf %21, %22 : vector<64x16xf32>
    %c0_24 = arith.constant 0 : index
    %c0_25 = arith.constant 0 : index
    %c0_26 = arith.constant 0 : index
    %24 = vector.load %arg7[%c0_24, %c0_25, %c0_26] : memref<3x16x64xf32, #tpu.memory_space<vmem>>, vector<1x16x64xf32>
    %25 = vector.shape_cast %24 : vector<1x16x64xf32> to vector<16x64xf32>
    %cst_27 = arith.constant dense<0.000000e+00> : vector<16x16xf32>
    %26 = tpu.matmul %25, %23, %cst_27 {dimension_numbers = #tpu.dot_dimension_numbers<[1], [0], [0], [1], [0, 0, 1, 1], [], []>} : vector<16x64xf32>, vector<64x16xf32>, vector<16x16xf32> -> vector<16x16xf32>
    %c0_28 = arith.constant 0 : index
    %c0_29 = arith.constant 0 : index
    %c0_30 = arith.constant 0 : index
    %27 = vector.load %arg8[%c0_28, %c0_29, %c0_30] : memref<3x16x1xf32, #tpu.memory_space<vmem>>, vector<1x16x1xf32>
    %28 = vector.shape_cast %27 : vector<1x16x1xf32> to vector<16x1xf32>
    %29 = vector.broadcast %28 : vector<16x1xf32> to vector<16x16xf32>
    %30 = arith.addf %26, %29 : vector<16x16xf32>
    %31 = vector.extract_strided_slice %30 {offsets = [0, 0], sizes = [8, 16], strides = [1, 1]} : vector<16x16xf32> to vector<8x16xf32>
    %32 = vector.extract_strided_slice %30 {offsets = [8, 0], sizes = [8, 16], strides = [1, 1]} : vector<16x16xf32> to vector<8x16xf32>
    %33 = arith.subf %0, %31 : vector<8x16xf32>
    %cst_31 = arith.constant 0.000000e+00 : f32
    %34 = vector.broadcast %cst_31 : f32 to vector<8x16xf32>
    %35 = arith.subf %34, %32 : vector<8x16xf32>
    %36 = math.exp %35 : vector<8x16xf32>
    %37 = arith.mulf %33, %36 : vector<8x16xf32>
    %cst_32 = arith.constant dense<0.000000e+00> : vector<16xf32>
    %38 = vector.multi_reduction <add>, %32, %cst_32 [0] : vector<8x16xf32> to vector<16xf32>
    %39 = vector.shape_cast %38 : vector<16xf32> to vector<1x16xf32>
    %40 = arith.addf %3, %39 : vector<1x16xf32>
    %c0_33 = arith.constant 0 : index
    %c0_34 = arith.constant 0 : index
    %41 = vector.load %arg11[%c0_33, %c0_34] : memref<12x16xf32, #tpu.memory_space<vmem>>, vector<8x16xf32>
    tpu.vector_store %arg11[%c0_33, %c0_34], %37 {strides = array<i32>} : memref<12x16xf32, #tpu.memory_space<vmem>>, vector<8x16xf32>,
    %c1 = arith.constant 1 : index
    %c0_35 = arith.constant 0 : index
    %c0_36 = arith.constant 0 : index
    %42 = vector.load %arg3[%c1, %c0_35, %c0_36] : memref<3x64x12xf32, #tpu.memory_space<vmem>>, vector<1x64x12xf32>
    %43 = vector.shape_cast %42 : vector<1x64x12xf32> to vector<64x12xf32>
    %c0_37 = arith.constant 0 : index
    %c0_38 = arith.constant 0 : index
    %44 = vector.load %arg11[%c0_37, %c0_38] : memref<12x16xf32, #tpu.memory_space<vmem>>, vector<12x16xf32>
    %cst_39 = arith.constant dense<0.000000e+00> : vector<64x16xf32>
    %45 = tpu.matmul %43, %44, %cst_39 {dimension_numbers = #tpu.dot_dimension_numbers<[1], [0], [0], [1], [0, 0, 1, 1], [], []>} : vector<64x12xf32>, vector<12x16xf32>, vector<64x16xf32> -> vector<64x16xf32>
    %c1_40 = arith.constant 1 : index
    %c0_41 = arith.constant 0 : index
    %c0_42 = arith.constant 0 : index
    %46 = vector.load %arg4[%c1_40, %c0_41, %c0_42] : memref<3x64x1xf32, #tpu.memory_space<vmem>>, vector<1x64x1xf32>
    %47 = vector.shape_cast %46 : vector<1x64x1xf32> to vector<64x1xf32>
    %48 = vector.broadcast %47 : vector<64x1xf32> to vector<64x16xf32>
    %49 = arith.addf %45, %48 : vector<64x16xf32>
    %cst_43 = arith.constant 0.000000e+00 : f32
    %50 = vector.broadcast %cst_43 : f32 to vector<64x16xf32>
    %51 = arith.maximumf %49, %50 : vector<64x16xf32>
    %c1_44 = arith.constant 1 : index
    %c0_45 = arith.constant 0 : index
    %c0_46 = arith.constant 0 : index
    %52 = vector.load %arg5[%c1_44, %c0_45, %c0_46] : memref<3x64x64xf32, #tpu.memory_space<vmem>>, vector<1x64x64xf32>
    %53 = vector.shape_cast %52 : vector<1x64x64xf32> to vector<64x64xf32>
    %cst_47 = arith.constant dense<0.000000e+00> : vector<64x16xf32>
    %54 = tpu.matmul %53, %51, %cst_47 {dimension_numbers = #tpu.dot_dimension_numbers<[1], [0], [0], [1], [0, 0, 1, 1], [], []>} : vector<64x64xf32>, vector<64x16xf32>, vector<64x16xf32> -> vector<64x16xf32>
    %c1_48 = arith.constant 1 : index
    %c0_49 = arith.constant 0 : index
    %c0_50 = arith.constant 0 : index
    %55 = vector.load %arg6[%c1_48, %c0_49, %c0_50] : memref<3x64x1xf32, #tpu.memory_space<vmem>>, vector<1x64x1xf32>
    %56 = vector.shape_cast %55 : vector<1x64x1xf32> to vector<64x1xf32>
    %57 = vector.broadcast %56 : vector<64x1xf32> to vector<64x16xf32>
    %58 = arith.addf %54, %57 : vector<64x16xf32>
    %cst_51 = arith.constant 0.000000e+00 : f32
    %59 = vector.broadcast %cst_51 : f32 to vector<64x16xf32>
    %60 = arith.maximumf %58, %59 : vector<64x16xf32>
    %c1_52 = arith.constant 1 : index
    %c0_53 = arith.constant 0 : index
    %c0_54 = arith.constant 0 : index
    %61 = vector.load %arg7[%c1_52, %c0_53, %c0_54] : memref<3x16x64xf32, #tpu.memory_space<vmem>>, vector<1x16x64xf32>
    %62 = vector.shape_cast %61 : vector<1x16x64xf32> to vector<16x64xf32>
    %cst_55 = arith.constant dense<0.000000e+00> : vector<16x16xf32>
    %63 = tpu.matmul %62, %60, %cst_55 {dimension_numbers = #tpu.dot_dimension_numbers<[1], [0], [0], [1], [0, 0, 1, 1], [], []>} : vector<16x64xf32>, vector<64x16xf32>, vector<16x16xf32> -> vector<16x16xf32>
    %c1_56 = arith.constant 1 : index
    %c0_57 = arith.constant 0 : index
    %c0_58 = arith.constant 0 : index
    %64 = vector.load %arg8[%c1_56, %c0_57, %c0_58] : memref<3x16x1xf32, #tpu.memory_space<vmem>>, vector<1x16x1xf32>
    %65 = vector.shape_cast %64 : vector<1x16x1xf32> to vector<16x1xf32>
    %66 = vector.broadcast %65 : vector<16x1xf32> to vector<16x16xf32>
    %67 = arith.addf %63, %66 : vector<16x16xf32>
    %68 = vector.extract_strided_slice %67 {offsets = [0, 0], sizes = [8, 16], strides = [1, 1]} : vector<16x16xf32> to vector<8x16xf32>
    %69 = vector.extract_strided_slice %67 {offsets = [8, 0], sizes = [8, 16], strides = [1, 1]} : vector<16x16xf32> to vector<8x16xf32>
    %70 = arith.subf %37, %68 : vector<8x16xf32>
    %cst_59 = arith.constant 0.000000e+00 : f32
    %71 = vector.broadcast %cst_59 : f32 to vector<8x16xf32>
    %72 = arith.subf %71, %69 : vector<8x16xf32>
    %73 = math.exp %72 : vector<8x16xf32>
    %74 = arith.mulf %70, %73 : vector<8x16xf32>
    %cst_60 = arith.constant dense<0.000000e+00> : vector<16xf32>
    %75 = vector.multi_reduction <add>, %69, %cst_60 [0] : vector<8x16xf32> to vector<16xf32>
    %76 = vector.shape_cast %75 : vector<16xf32> to vector<1x16xf32>
    %77 = arith.addf %40, %76 : vector<1x16xf32>
    %c0_61 = arith.constant 0 : index
    %c0_62 = arith.constant 0 : index
    %78 = vector.load %arg11[%c0_61, %c0_62] : memref<12x16xf32, #tpu.memory_space<vmem>>, vector<8x16xf32>
    tpu.vector_store %arg11[%c0_61, %c0_62], %74 {strides = array<i32>} : memref<12x16xf32, #tpu.memory_space<vmem>>, vector<8x16xf32>,
    %c2 = arith.constant 2 : index
    %c0_63 = arith.constant 0 : index
    %c0_64 = arith.constant 0 : index
    %79 = vector.load %arg3[%c2, %c0_63, %c0_64] : memref<3x64x12xf32, #tpu.memory_space<vmem>>, vector<1x64x12xf32>
    %80 = vector.shape_cast %79 : vector<1x64x12xf32> to vector<64x12xf32>
    %c0_65 = arith.constant 0 : index
    %c0_66 = arith.constant 0 : index
    %81 = vector.load %arg11[%c0_65, %c0_66] : memref<12x16xf32, #tpu.memory_space<vmem>>, vector<12x16xf32>
    %cst_67 = arith.constant dense<0.000000e+00> : vector<64x16xf32>
    %82 = tpu.matmul %80, %81, %cst_67 {dimension_numbers = #tpu.dot_dimension_numbers<[1], [0], [0], [1], [0, 0, 1, 1], [], []>} : vector<64x12xf32>, vector<12x16xf32>, vector<64x16xf32> -> vector<64x16xf32>
    %c2_68 = arith.constant 2 : index
    %c0_69 = arith.constant 0 : index
    %c0_70 = arith.constant 0 : index
    %83 = vector.load %arg4[%c2_68, %c0_69, %c0_70] : memref<3x64x1xf32, #tpu.memory_space<vmem>>, vector<1x64x1xf32>
    %84 = vector.shape_cast %83 : vector<1x64x1xf32> to vector<64x1xf32>
    %85 = vector.broadcast %84 : vector<64x1xf32> to vector<64x16xf32>
    %86 = arith.addf %82, %85 : vector<64x16xf32>
    %cst_71 = arith.constant 0.000000e+00 : f32
    %87 = vector.broadcast %cst_71 : f32 to vector<64x16xf32>
    %88 = arith.maximumf %86, %87 : vector<64x16xf32>
    %c2_72 = arith.constant 2 : index
    %c0_73 = arith.constant 0 : index
    %c0_74 = arith.constant 0 : index
    %89 = vector.load %arg5[%c2_72, %c0_73, %c0_74] : memref<3x64x64xf32, #tpu.memory_space<vmem>>, vector<1x64x64xf32>
    %90 = vector.shape_cast %89 : vector<1x64x64xf32> to vector<64x64xf32>
    %cst_75 = arith.constant dense<0.000000e+00> : vector<64x16xf32>
    %91 = tpu.matmul %90, %88, %cst_75 {dimension_numbers = #tpu.dot_dimension_numbers<[1], [0], [0], [1], [0, 0, 1, 1], [], []>} : vector<64x64xf32>, vector<64x16xf32>, vector<64x16xf32> -> vector<64x16xf32>
    %c2_76 = arith.constant 2 : index
    %c0_77 = arith.constant 0 : index
    %c0_78 = arith.constant 0 : index
    %92 = vector.load %arg6[%c2_76, %c0_77, %c0_78] : memref<3x64x1xf32, #tpu.memory_space<vmem>>, vector<1x64x1xf32>
    %93 = vector.shape_cast %92 : vector<1x64x1xf32> to vector<64x1xf32>
    %94 = vector.broadcast %93 : vector<64x1xf32> to vector<64x16xf32>
    %95 = arith.addf %91, %94 : vector<64x16xf32>
    %cst_79 = arith.constant 0.000000e+00 : f32
    %96 = vector.broadcast %cst_79 : f32 to vector<64x16xf32>
    %97 = arith.maximumf %95, %96 : vector<64x16xf32>
    %c2_80 = arith.constant 2 : index
    %c0_81 = arith.constant 0 : index
    %c0_82 = arith.constant 0 : index
    %98 = vector.load %arg7[%c2_80, %c0_81, %c0_82] : memref<3x16x64xf32, #tpu.memory_space<vmem>>, vector<1x16x64xf32>
    %99 = vector.shape_cast %98 : vector<1x16x64xf32> to vector<16x64xf32>
    %cst_83 = arith.constant dense<0.000000e+00> : vector<16x16xf32>
    %100 = tpu.matmul %99, %97, %cst_83 {dimension_numbers = #tpu.dot_dimension_numbers<[1], [0], [0], [1], [0, 0, 1, 1], [], []>} : vector<16x64xf32>, vector<64x16xf32>, vector<16x16xf32> -> vector<16x16xf32>
    %c2_84 = arith.constant 2 : index
    %c0_85 = arith.constant 0 : index
    %c0_86 = arith.constant 0 : index
    %101 = vector.load %arg8[%c2_84, %c0_85, %c0_86] : memref<3x16x1xf32, #tpu.memory_space<vmem>>, vector<1x16x1xf32>
    %102 = vector.shape_cast %101 : vector<1x16x1xf32> to vector<16x1xf32>
    %103 = vector.broadcast %102 : vector<16x1xf32> to vector<16x16xf32>
    %104 = arith.addf %100, %103 : vector<16x16xf32>
    %105 = vector.extract_strided_slice %104 {offsets = [0, 0], sizes = [8, 16], strides = [1, 1]} : vector<16x16xf32> to vector<8x16xf32>
    %106 = vector.extract_strided_slice %104 {offsets = [8, 0], sizes = [8, 16], strides = [1, 1]} : vector<16x16xf32> to vector<8x16xf32>
    %107 = arith.subf %74, %105 : vector<8x16xf32>
    %cst_87 = arith.constant 0.000000e+00 : f32
    %108 = vector.broadcast %cst_87 : f32 to vector<8x16xf32>
    %109 = arith.subf %108, %106 : vector<8x16xf32>
    %110 = math.exp %109 : vector<8x16xf32>
    %111 = arith.mulf %107, %110 : vector<8x16xf32>
    %cst_88 = arith.constant dense<0.000000e+00> : vector<16xf32>
    %112 = vector.multi_reduction <add>, %106, %cst_88 [0] : vector<8x16xf32> to vector<16xf32>
    %113 = vector.shape_cast %112 : vector<16xf32> to vector<1x16xf32>
    %114 = arith.addf %77, %113 : vector<1x16xf32>
    %c0_89 = arith.constant 0 : index
    %c0_90 = arith.constant 0 : index
    %115 = vector.load %arg9[%c0_89, %c0_90] : memref<8x16xf32, #tpu.memory_space<vmem>>, vector<8x16xf32>
    tpu.vector_store %arg9[%c0_89, %c0_90], %111 {strides = array<i32>} : memref<8x16xf32, #tpu.memory_space<vmem>>, vector<8x16xf32>,
    %c0_91 = arith.constant 0 : index
    %c0_92 = arith.constant 0 : index
    %116 = vector.load %arg10[%c0_91, %c0_92] : memref<1x16xf32, #tpu.memory_space<vmem>>, vector<1x16xf32>
    tpu.vector_store %arg10[%c0_91, %c0_92], %114 {strides = array<i32>} : memref<1x16xf32, #tpu.memory_space<vmem>>, vector<1x16xf32>,
    return
  }
  func.func @transform_0(%arg0: i32) -> (i32, i32) {
    %c0_i32 = arith.constant 0 : i32
    %c0_i32_0 = arith.constant 0 : i32
    return %c0_i32, %arg0 : i32, i32
  }
  func.func @transform_1(%arg0: i32) -> (i32, i32) {
    %c0_i32 = arith.constant 0 : i32
    %c0_i32_0 = arith.constant 0 : i32
    return %c0_i32, %arg0 : i32, i32
  }
  func.func @transform_2(%arg0: i32) -> (i32, i32, i32) {
    %c0_i32 = arith.constant 0 : i32
    %c0_i32_0 = arith.constant 0 : i32
    %c0_i32_1 = arith.constant 0 : i32
    %c0_i32_2 = arith.constant 0 : i32
    return %c0_i32, %c0_i32_0, %c0_i32_1 : i32, i32, i32
  }
  func.func @transform_3(%arg0: i32) -> (i32, i32, i32) {
    %c0_i32 = arith.constant 0 : i32
    %c0_i32_0 = arith.constant 0 : i32
    %c0_i32_1 = arith.constant 0 : i32
    %c0_i32_2 = arith.constant 0 : i32
    return %c0_i32, %c0_i32_0, %c0_i32_1 : i32, i32, i32
  }
  func.func @transform_4(%arg0: i32) -> (i32, i32, i32) {
    %c0_i32 = arith.constant 0 : i32
    %c0_i32_0 = arith.constant 0 : i32
    %c0_i32_1 = arith.constant 0 : i32
    %c0_i32_2 = arith.constant 0 : i32
    return %c0_i32, %c0_i32_0, %c0_i32_1 : i32, i32, i32
  }
  func.func @transform_5(%arg0: i32) -> (i32, i32, i32) {
    %c0_i32 = arith.constant 0 : i32
    %c0_i32_0 = arith.constant 0 : i32
    %c0_i32_1 = arith.constant 0 : i32
    %c0_i32_2 = arith.constant 0 : i32
    return %c0_i32, %c0_i32_0, %c0_i32_1 : i32, i32, i32
  }
  func.func @transform_6(%arg0: i32) -> (i32, i32, i32) {
    %c0_i32 = arith.constant 0 : i32
    %c0_i32_0 = arith.constant 0 : i32
    %c0_i32_1 = arith.constant 0 : i32
    %c0_i32_2 = arith.constant 0 : i32
    return %c0_i32, %c0_i32_0, %c0_i32_1 : i32, i32, i32
  }
  func.func @transform_7(%arg0: i32) -> (i32, i32, i32) {
    %c0_i32 = arith.constant 0 : i32
    %c0_i32_0 = arith.constant 0 : i32
    %c0_i32_1 = arith.constant 0 : i32
    %c0_i32_2 = arith.constant 0 : i32
    return %c0_i32, %c0_i32_0, %c0_i32_1 : i32, i32, i32
  }
  func.func @transform_8(%arg0: i32) -> (i32, i32) {
    %c0_i32 = arith.constant 0 : i32
    %c0_i32_0 = arith.constant 0 : i32
    return %c0_i32, %arg0 : i32, i32
  }
  func.func @transform_9(%arg0: i32) -> (i32, i32) {
    %c0_i32 = arith.constant 0 : i32
    %c0_i32_0 = arith.constant 0 : i32
    return %c0_i32, %arg0 : i32, i32
  }
}

</mosaic_0001>

<bundles_post_ra>
// kernel: tpu_custom_call.1
= control target key start
LH: loop header
LB: loop body
LE: loop exit
PB: predicated region body
PF: predicated region fallthrough
CT: control target
= control target key end

     0   :  { %15 = vsyncpa [#allocation4], 0  ;;  %vm35_vm0 = vcmask 125952   ;;  %vm37_vm1 = vcmask 130048   ;;  %v2184_v2 = vmov 0   ;;  %vm97_vm2 = vcmask 97280   ;;  %s2695_s0 = inlined_call_operand.vmem [shape: f32[8,16], index: 0, kind: input, shape index: {}]   ;;  %s2696_s1 = inlined_call_operand.vmem [shape: f32[4,16], index: 1, kind: input, shape index: {}]   ;;  %s2697_s2 = inlined_call_operand.vmem [shape: f32[3,64,12], index: 2, kind: input, shape index: {}]   ;;  %s2698_s3 = inlined_call_operand.vmem [shape: f32[3,64,1], index: 3, kind: input, shape index: {}]   ;;  %s2699_s4 = inlined_call_operand.vmem [shape: f32[3,64,64], index: 4, kind: input, shape index: {}]   ;;  %s2700_s5 = inlined_call_operand.vmem [shape: f32[3,64,1], index: 5, kind: input, shape index: {}]   ;;  %s2701_s6 = inlined_call_operand.vmem [shape: f32[3,16,64], index: 6, kind: input, shape index: {}]   ;;  %s2702_s7 = inlined_call_operand.vmem [shape: f32[3,16,1], index: 7, kind: input, shape index: {}]   ;;  %s2703_s8 = inlined_call_operand.hbm [shape: f32[8,16], index: 8, kind: output, shape index: {0}]   ;;  %s2704_s9 = inlined_call_operand.hbm [shape: f32[1,16], index: 9, kind: output, shape index: {1}]  }
   0x1   :  { %v51_v0 = vld [vmem:[%s2698_s3 + $0x10] sm:$0xff]  ;;  %v49_v1 = vld [vmem:[%s2698_s3] sm:$0xff]  ;;  %2129 = vset.pattern.permute.xlu1 %v2184_v2  ;;  %2128 = vset.pattern.permute.xlu0 %v2184_v2  ;;  %v52_v5 = vld [vmem:[%s2698_s3 + $0x18] sm:$0xff]  ;;  %vm122_vm3 = vcmask 1043456   ;;  %vm2185_vm4 = vmmov 1  }
   0x2   :  { %69 = vperm.xlu1 %2129, %v51_v0   ;;  %59 = vperm.xlu0 %2128, %v49_v1   ;;  %v2247_v3 = vld [vmem:[%s2695_s0] sm:$0xff]  ;;  %v50_v6 = vld [vmem:[%s2698_s3 + $0x8] sm:$0xff]  ;;  %vm2270_vm5 = vmpackc.low %vm122_vm3, %vm2185_vm4 }
   0x3   :  { %v34_v4 = vld [vmem:[%s2696_s1] sm:$0xf]  ;;  %38 = vst.msk [vmem:[#allocation2] sm:$0xff] %vm37_vm1, %v2247_v3  ;;  %v54_v8 = vld [vmem:[%s2698_s3 + $0x28] sm:$0xff]  ;;  %v56_v14 = vld [vmem:[%s2698_s3 + $0x38] sm:$0xff] }
   0x4   :  { %36 = vst.msk [vmem:[#allocation2 + $0x8] sm:$0xf] %vm35_vm0, %v34_v4  ;;  %v39_v7 = vld [vmem:[%s2697_s2] sm:$0xff]  ;;  %v55_v15 = vld [vmem:[%s2698_s3 + $0x30] sm:$0xff]  ;;  %v40_v16 = vld [vmem:[%s2697_s2 + $0x8] sm:$0xff] }
   0x5   :  { %1825 = vmatprep.mubr.msk.f32.mxu0 %vm97_vm2, %v39_v7  ;;  %v53_v9 = vld [vmem:[%s2698_s3 + $0x20] sm:$0xff]  ;;  %v248_v17 = vld [vmem:[%s2700_s5 + $0x8] sm:$0xff]  ;;  %v41_v18 = vld [vmem:[%s2697_s2 + $0x10] sm:$0xff] }
   0x6   :  { %74 = vperm.xlu1 %2129, %v52_v5   ;;  %64 = vperm.xlu0 %2128, %v50_v6   ;;  %v247_v19 = vld [vmem:[%s2700_s5] sm:$0xff]  ;;  %v42_v20 = vld [vmem:[%s2697_s2 + $0x18] sm:$0xff]  ;;  %v249_v23 = vld [vmem:[%s2700_s5 + $0x10] sm:$0xff] }
   0x7   :  { %v250_v21 = vld [vmem:[%s2700_s5 + $0x18] sm:$0xff]  ;;  %v43_v22 = vld [vmem:[%s2697_s2 + $0x20] sm:$0xff]  ;;  %v44_v24 = vld [vmem:[%s2697_s2 + $0x28] sm:$0xff] }
   0xa   :  { %84 = vperm.xlu1 %2129, %v54_v8   ;;  %79 = vperm.xlu0 %2128, %v53_v9   ;;  %v47_v10 = vld [vmem:[#allocation2] sm:$0xff] }
   0xb   :  { %v48_v11 = vld [vmem:[#allocation2 + $0x8] sm:$0xf] }
   0xc   :  { %v2010_v13 = vpack.c.bf16 %v48_v11, %v47_v10 }
   0xe   :  { %2012 = vmatprep.subr.msk.bf16.mxu0 %vm2270_vm5, %v2010_v13  ;;  %94 = vperm.xlu1 %2129, %v56_v14  }
   0xf   :  { %2015 = vmatpush3.bf16.msk.msra.mxu0 %vm2270_vm5, %v2010_v13  ;;  %89 = vperm.xlu0 %2128, %v55_v15  }
  0x12   :  { %1826 = vmatmul.mubr.msk.f32.vlgmr.msra.gmra.mrb[0].mxu0 %vm97_vm2, %v40_v16  ;;  %262 = vperm.xlu1 %2129, %v248_v17  }
  0x13   :  { %1828 = vmatprep.mubr.msk.f32.mxu0 %vm97_vm2, %v41_v18  ;;  %257 = vperm.xlu0 %2128, %v247_v19  }
  0x16   :  { %1829 = vmatmul.mubr.msk.f32.gmra.mrb[2].mxu0 %vm97_vm2, %v42_v20  ;;  %272 = vperm.xlu1 %2129, %v250_v21  }
  0x17   :  { %1831 = vmatprep.mubr.msk.f32.mxu0 %vm97_vm2, %v43_v22 }
  0x18   :  { %16 = vsyncpa [#allocation6], 0  ;;  %267 = vperm.xlu0 %2128, %v249_v23   ;;  %v252_v25 = vld [vmem:[%s2700_s5 + $0x28] sm:$0xff]  ;;  %v45_v26 = vld [vmem:[%s2697_s2 + $0x30] sm:$0xff]  ;;  %vm295_vm6 = vcmask 523264   ;;  %s2186_s29 = smov [#allocation5]  }
  0x19   :  { %v251_v27 = vld [vmem:[%s2700_s5 + $0x20] sm:$0xff]  ;;  %v46_v28 = vld [vmem:[%s2697_s2 + $0x38] sm:$0xff]  ;;  %v253_v30 = vld [vmem:[%s2700_s5 + $0x30] sm:$0xff]  ;;  %s2187_s30 = smov [#allocation3]   ;;  %vm1554_vm7 = vcmask 122880  }
  0x1a   :  { %1832 = vmatmul.mubr.msk.f32.gmra.mrb[4].mxu0 %vm97_vm2, %v44_v24  ;;  %282 = vperm.xlu1 %2129, %v252_v25   ;;  %v254_v29 = vld [vmem:[%s2700_s5 + $0x38] sm:$0xff]  ;;  %v435_v31 = vld [vmem:[%s2702_s7] sm:$0xff]  ;;  %v436_v32 = vld [vmem:[%s2702_s7 + $0x8] sm:$0xff] }
  0x1b   :  { %1834 = vmatprep.mubr.msk.f32.mxu0 %vm97_vm2, %v45_v26  ;;  %v1612_v33 = vld [vmem:[%s2698_s3 + $0x48] sm:$0xff]  ;;  %v1611_v34 = vld [vmem:[%s2698_s3 + $0x40] sm:$0xff]  ;;  %v1614_v35 = vld [vmem:[%s2698_s3 + $0x58] sm:$0xff] }
  0x1c   :  { %277 = vperm.xlu0 %2128, %v251_v27   ;;  %v1613_v36 = vld [vmem:[%s2698_s3 + $0x50] sm:$0xff]  ;;  %v1616_v37 = vld [vmem:[%s2698_s3 + $0x68] sm:$0xff]  ;;  %v1615_v38 = vld [vmem:[%s2698_s3 + $0x60] sm:$0xff] }
  0x1d   :  { %v1618_v39 = vld [vmem:[%s2698_s3 + $0x78] sm:$0xff]  ;;  %v1617_v40 = vld [vmem:[%s2698_s3 + $0x70] sm:$0xff]  ;;  %v1637_v41 = vld [vmem:[%s2700_s5 + $0x48] sm:$0xff] }
  0x1e   :  { %1835 = vmatmul.mubr.msk.f32.gmra.mrb[6].mxu0 %vm97_vm2, %v46_v28  ;;  %292 = vperm.xlu1 %2129, %v254_v29   ;;  %v1636_v42 = vld [vmem:[%s2700_s5 + $0x40] sm:$0xff]  ;;  %v1639_v43 = vld [vmem:[%s2700_s5 + $0x58] sm:$0xff]  ;;  %v1638_v44 = vld [vmem:[%s2700_s5 + $0x50] sm:$0xff] }
  0x1f   :  { %v1641_v45 = vld [vmem:[%s2700_s5 + $0x68] sm:$0xff]  ;;  %v1640_v46 = vld [vmem:[%s2700_s5 + $0x60] sm:$0xff]  ;;  %v1643_v47 = vld [vmem:[%s2700_s5 + $0x78] sm:$0xff] }
  0x20   :  { %287 = vperm.xlu0 %2128, %v253_v30   ;;  %v1642_v48 = vld [vmem:[%s2700_s5 + $0x70] sm:$0xff]  ;;  %v1655_v50 = vld [vmem:[%s2702_s7 + $0x18] sm:$0xff]  ;;  %v1667_v51 = vld [vmem:[%s2698_s3 + $0x88] sm:$0xff] }
  0x21   :  { %v1654_v49 = vld [vmem:[%s2702_s7 + $0x10] sm:$0xff]  ;;  %v1666_v52 = vld [vmem:[%s2698_s3 + $0x80] sm:$0xff]  ;;  %v1669_v53 = vld [vmem:[%s2698_s3 + $0x98] sm:$0xff] }
  0x22   :  { %439 = vperm.xlu1 %2129, %v435_v31   ;;  %v1668_v54 = vld [vmem:[%s2698_s3 + $0x90] sm:$0xff]  ;;  %v1671_v55 = vld [vmem:[%s2698_s3 + $0xa8] sm:$0xff]  ;;  %v1670_v56 = vld [vmem:[%s2698_s3 + $0xa0] sm:$0xff] }
  0x23   :  { %v1673_v57 = vld [vmem:[%s2698_s3 + $0xb8] sm:$0xff]  ;;  %v1672_v58 = vld [vmem:[%s2698_s3 + $0xb0] sm:$0xff]  ;;  %v1692_v59 = vld [vmem:[%s2700_s5 + $0x88] sm:$0xff]  ;;  %s1562_s3 = sshll.u32 %s2187_s30, 4  ;;  %s2663_s3 = int_to_ptr.vmem [resolvable:$true] %s1562_s3 }
  0x24   :  { %444 = vperm.xlu0 %2128, %v436_v32   ;;  %v1691_v60 = vld [vmem:[%s2700_s5 + $0x80] sm:$0xff]  ;;  %v1694_v61 = vld [vmem:[%s2700_s5 + $0x98] sm:$0xff]  ;;  %v1693_v62 = vld [vmem:[%s2700_s5 + $0x90] sm:$0xff] }
  0x25   :  { %v1696_v63 = vld [vmem:[%s2700_s5 + $0xa8] sm:$0xff]  ;;  %v1695_v0 = vld [vmem:[%s2700_s5 + $0xa0] sm:$0xff]  ;;  %v1698_v1 = vld [vmem:[%s2700_s5 + $0xb8] sm:$0xff] }
  0x26   :  { %569 = vperm.xlu1 %2129, %v1612_v33   ;;  %v1697_v2 = vld [vmem:[%s2700_s5 + $0xb0] sm:$0xff]  ;;  %v1709_v4 = vld [vmem:[%s2702_s7 + $0x20] sm:$0xff]  ;;  %v1710_v5 = vld [vmem:[%s2702_s7 + $0x28] sm:$0xff] }
  0x27   :  { %v239_v6 = vld [vmem:[%s2699_s4] sm:$0xff] }
  0x28   :  { %564 = vperm.xlu0 %2128, %v1611_v34   ;;  %1853 = vmatprep.mubr.msk.f32.mxu1 %vm295_vm6, %v239_v6  ;;  %v1662_v12 = vld [vmem:[%s2697_s2 + $0xa0] sm:$0xff] }
  0x2a   :  { %579 = vperm.xlu1 %2129, %v1614_v35  }
  0x2c   :  { %574 = vperm.xlu0 %2128, %v1613_v36  }
  0x2e   :  { %589 = vperm.xlu1 %2129, %v1616_v37  }
  0x30   :  { %584 = vperm.xlu0 %2128, %v1615_v38  }
  0x32   :  { %599 = vperm.xlu1 %2129, %v1618_v39  }
  0x34   :  { %594 = vperm.xlu0 %2128, %v1617_v40  }
  0x36   :  { %767 = vperm.xlu1 %2129, %v1637_v41  }
  0x38   :  { %762 = vperm.xlu0 %2128, %v1636_v42  }
  0x3a   :  { %777 = vperm.xlu1 %2129, %v1639_v43  }
  0x3c   :  { %772 = vperm.xlu0 %2128, %v1638_v44   ;;  %v240_v44 = vld [vmem:[%s2699_s4 + $0x8] sm:$0xff] }
  0x3e   :  { %787 = vperm.xlu1 %2129, %v1641_v45   ;;  %v241_v45 = vld [vmem:[%s2699_s4 + $0x10] sm:$0xff] }
  0x40   :  { %782 = vperm.xlu0 %2128, %v1640_v46   ;;  %v242_v46 = vld [vmem:[%s2699_s4 + $0x18] sm:$0xff] }
  0x42   :  { %797 = vperm.xlu1 %2129, %v1643_v47   ;;  %v243_v47 = vld [vmem:[%s2699_s4 + $0x20] sm:$0xff] }
  0x44   :  { %792 = vperm.xlu0 %2128, %v1642_v48   ;;  %v244_v48 = vld [vmem:[%s2699_s4 + $0x28] sm:$0xff] }
  0x46   :  { %945 = vperm.xlu1 %2129, %v1654_v49   ;;  %v245_v49 = vld [vmem:[%s2699_s4 + $0x30] sm:$0xff] }
  0x48   :  { %950 = vperm.xlu0 %2128, %v1655_v50   ;;  %v246_v50 = vld [vmem:[%s2699_s4 + $0x38] sm:$0xff] }
  0x4a   :  { %1075 = vperm.xlu1 %2129, %v1667_v51   ;;  %v433_v51 = vld [vmem:[%s2701_s6] sm:$0xff] }
  0x4b   :  { %1881 = vmatprep.mubr.msk.f32.mxu0 %vm295_vm6, %v433_v51 }
  0x4c   :  { %1070 = vperm.xlu0 %2128, %v1666_v52  }
  0x4e   :  { %1085 = vperm.xlu1 %2129, %v1669_v53  }
  0x50   :  { %1080 = vperm.xlu0 %2128, %v1668_v54  }
  0x52   :  { %1095 = vperm.xlu1 %2129, %v1671_v55  }
  0x54   :  { %1090 = vperm.xlu0 %2128, %v1670_v56  }
  0x56   :  { %1105 = vperm.xlu1 %2129, %v1673_v57  }
  0x58   :  { %1100 = vperm.xlu0 %2128, %v1672_v58  }
  0x5a   :  { %1273 = vperm.xlu1 %2129, %v1692_v59  }
  0x5c   :  { %1268 = vperm.xlu0 %2128, %v1691_v60  }
  0x5e   :  { %1283 = vperm.xlu1 %2129, %v1694_v61  }
  0x60   :  { %1278 = vperm.xlu0 %2128, %v1693_v62  }
  0x62   :  { %1293 = vperm.xlu1 %2129, %v1696_v63  }
  0x64   :  { %1288 = vperm.xlu0 %2128, %v1695_v0  }
  0x66   :  { %1303 = vperm.xlu1 %2129, %v1698_v1  }
  0x68   :  { %1298 = vperm.xlu0 %2128, %v1697_v2  }
  0x6a   :  { %1451 = vperm.xlu1 %2129, %v1709_v4  }
  0x6c   :  { %1456 = vperm.xlu0 %2128, %v1710_v5  }
  0x81   :  { %v70_v7 = vpop.permute.xlu1 %69  ;;  %v60_v8 = vpop.permute.xlu0 %59 }
  0x85   :  { %v75_v9 = vpop.permute.xlu1 %74  ;;  %v65_v10 = vpop.permute.xlu0 %64 }
  0x89   :  { %v85_v21 = vpop.permute.xlu1 %84  ;;  %v80_v24 = vpop.permute.xlu0 %79 }
  0x8d   :  { %v95_v33 = vpop.permute.xlu1 %94 }
  0x8e   :  { %v90_v36 = vpop.permute.xlu0 %89 }
  0x91   :  { %v263_v52 = vpop.permute.xlu1 %262 }
  0x92   :  { %v258_v53 = vpop.permute.xlu0 %257 }
  0x95   :  { %v273_v54 = vpop.permute.xlu1 %272 }
  0x97   :  { %v268_v56 = vpop.permute.xlu0 %267 }
  0x99   :  { %v283_v1 = vpop.permute.xlu1 %282 }
  0x9b   :  { %v278_v5 = vpop.permute.xlu0 %277 }
  0xe5   :  { %v1827_v11 = vpop.f32.mrb[0].mxu0 }
  0xe6   :  { %v198_v13 = vadd.f32 %v1827_v11, %v65_v10  ;;  %v192_v14 = vpop.f32.mrb[1].mxu0 }
  0xe7   :  { %v193_v15 = vadd.f32 %v192_v14, %v60_v8 }
  0xe8   :  { %v232_v16 = vmax.f32 %v198_v13, 0.0 }
  0xe9   :  { %v231_v17 = vmax.f32 %v193_v15, 0.0  ;;  %v1830_v18 = vpop.f32.mrb[2].mxu0  ;;  %v293_v15 = vpop.permute.xlu1 %292 }
  0xea   :  { %v208_v19 = vadd.f32 %v1830_v18, %v75_v9  ;;  %v202_v20 = vpop.f32.mrb[3].mxu0  ;;  %v288_v18 = vpop.permute.xlu0 %287 }
  0xeb   :  { %v203_v22 = vadd.f32 %v202_v20, %v70_v7  ;;  %v2016_v23 = vpack.c.bf16 %v232_v16, %v231_v17 }
  0xec   :  { %v234_v25 = vmax.f32 %v208_v19, 0.0 }
  0xed   :  { %v233_v26 = vmax.f32 %v203_v22, 0.0  ;;  %v1833_v27 = vpop.f32.mrb[4].mxu0  ;;  %2017 = vmatprep.subr.bf16.mxu1 %v2016_v23 }
  0xee   :  { %v218_v28 = vadd.f32 %v1833_v27, %v85_v21  ;;  %v212_v29 = vpop.f32.mrb[5].mxu0  ;;  %2019 = vmatpush3.bf16.msra.mxu1 %v2016_v23  ;;  %v1603_v27 = vld [vmem:[%s2697_s2 + $0x40] sm:$0xff] }
  0xef   :  { %v2020_v30 = vpack.c.bf16 %v234_v25, %v233_v26  ;;  %v213_v31 = vadd.f32 %v212_v29, %v80_v24  ;;  %v434_v26 = vld [vmem:[%s2701_s6 + $0x8] sm:$0xff] }
  0xf0   :  { %v236_v32 = vmax.f32 %v218_v28, 0.0  ;;  %v445_v28 = vpop.permute.xlu0 %444 }
  0xf1   :  { %v235_v34 = vmax.f32 %v213_v31, 0.0  ;;  %v1836_v35 = vpop.f32.mrb[6].mxu0  ;;  %2021 = vmatprep.subr.bf16.mxu1 %v2020_v30 }
  0xf2   :  { %v228_v37 = vadd.f32 %v1836_v35, %v95_v33  ;;  %v222_v38 = vpop.f32.mrb[7].mxu0  ;;  %2023 = vmatpush3.bf16.msra.mxu1 %v2020_v30 }
  0xf3   :  { %v2024_v39 = vpack.c.bf16 %v236_v32, %v235_v34  ;;  %v223_v40 = vadd.f32 %v222_v38, %v90_v36  ;;  %v440_v34 = vpop.permute.xlu1 %439 }
  0xf4   :  { %v238_v41 = vmax.f32 %v228_v37, 0.0 }
  0xf5   :  { %v237_v42 = vmax.f32 %v223_v40, 0.0  ;;  %2025 = vmatprep.subr.bf16.mxu1 %v2024_v39 }
  0xf6   :  { %2027 = vmatpush3.bf16.msra.mxu1 %v2024_v39  ;;  %v552_v39 = vld [vmem:[#allocation2 + $0x8] sm:$0xf] }
  0xf7   :  { %v2028_v43 = vpack.c.bf16 %v238_v41, %v237_v42  ;;  %v1604_v42 = vld [vmem:[%s2697_s2 + $0x48] sm:$0xff] }
  0xf9   :  { %2029 = vmatprep.subr.bf16.mxu1 %v2028_v43 }
  0xfa   :  { %2031 = vmatpush3.bf16.msra.mxu1 %v2028_v43  ;;  %v1606_v43 = vld [vmem:[%s2697_s2 + $0x58] sm:$0xff] }
  0xfd   :  { %1854 = vmatmul.mubr.msk.f32.vlgmr.msra.gmra.mrb[0].mxu1 %vm295_vm6, %v240_v44  ;;  %v1607_v44 = vld [vmem:[%s2697_s2 + $0x60] sm:$0xff] }
  0xfe   :  { %1856 = vmatprep.mubr.msk.f32.mxu1 %vm295_vm6, %v241_v45  ;;  %v1608_v45 = vld [vmem:[%s2697_s2 + $0x68] sm:$0xff] }
 0x101   :  { %1857 = vmatmul.mubr.msk.f32.gmra.mrb[2].mxu1 %vm295_vm6, %v242_v46  ;;  %v1609_v46 = vld [vmem:[%s2697_s2 + $0x70] sm:$0xff] }
 0x102   :  { %1859 = vmatprep.mubr.msk.f32.mxu1 %vm295_vm6, %v243_v47  ;;  %v1610_v47 = vld [vmem:[%s2697_s2 + $0x78] sm:$0xff] }
 0x105   :  { %1860 = vmatmul.mubr.msk.f32.gmra.mrb[4].mxu1 %vm295_vm6, %v244_v48  ;;  %v1628_v48 = vld [vmem:[%s2699_s4 + $0x40] sm:$0xff] }
 0x106   :  { %1862 = vmatprep.mubr.msk.f32.mxu1 %vm295_vm6, %v245_v49  ;;  %v570_v49 = vpop.permute.xlu1 %569 }
 0x109   :  { %1863 = vmatmul.mubr.msk.f32.gmra.mrb[6].mxu1 %vm295_vm6, %v246_v50  ;;  %v565_v50 = vpop.permute.xlu0 %564 }
 0x10a   :  { %1916 = vmatprep.mubr.msk.f32.mxu1 %vm295_vm6, %v1628_v48  ;;  %v580_v51 = vpop.permute.xlu1 %579 }
 0x1d0   :  { %v1855_v55 = vpop.f32.mrb[0].mxu1 }
 0x1d1   :  { %v392_v57 = vadd.f32 %v1855_v55, %v263_v52  ;;  %v386_v58 = vpop.f32.mrb[1].mxu1 }
 0x1d2   :  { %v387_v59 = vadd.f32 %v386_v58, %v258_v53  ;;  %v575_v53 = vpop.permute.xlu0 %574 }
 0x1d3   :  { %v426_v60 = vmax.f32 %v392_v57, 0.0 }
 0x1d4   :  { %v425_v61 = vmax.f32 %v387_v59, 0.0  ;;  %v1858_v62 = vpop.f32.mrb[2].mxu1 }
 0x1d5   :  { %v402_v63 = vadd.f32 %v1858_v62, %v273_v54  ;;  %v396_v0 = vpop.f32.mrb[3].mxu1  ;;  %v590_v62 = vpop.permute.xlu1 %589 }
 0x1d6   :  { %v2032_v2 = vpack.c.bf16 %v426_v60, %v425_v61  ;;  %v397_v4 = vadd.f32 %v396_v0, %v268_v56 }
 0x1d7   :  { %v428_v6 = vmax.f32 %v402_v63, 0.0 }
 0x1d8   :  { %v427_v7 = vmax.f32 %v397_v4, 0.0  ;;  %v1861_v8 = vpop.f32.mrb[4].mxu1  ;;  %2033 = vmatprep.subr.bf16.mxu0 %v2032_v2 }
 0x1d9   :  { %v412_v9 = vadd.f32 %v1861_v8, %v283_v1  ;;  %v406_v10 = vpop.f32.mrb[5].mxu1  ;;  %2035 = vmatpush3.bf16.msra.mxu0 %v2032_v2  ;;  %v585_v1 = vpop.permute.xlu0 %584 }
 0x1da   :  { %v2036_v11 = vpack.c.bf16 %v428_v6, %v427_v7  ;;  %v407_v13 = vadd.f32 %v406_v10, %v278_v5 }
 0x1db   :  { %v430_v14 = vmax.f32 %v412_v9, 0.0 }
 0x1dc   :  { %v429_v16 = vmax.f32 %v407_v13, 0.0  ;;  %v1864_v17 = vpop.f32.mrb[6].mxu1  ;;  %2037 = vmatprep.subr.bf16.mxu0 %v2036_v11 }
 0x1dd   :  { %v422_v19 = vadd.f32 %v1864_v17, %v293_v15  ;;  %v416_v20 = vpop.f32.mrb[7].mxu1  ;;  %2039 = vmatpush3.bf16.msra.mxu0 %v2036_v11  ;;  %v600_v11 = vpop.permute.xlu1 %599 }
 0x1de   :  { %v2040_v21 = vpack.c.bf16 %v430_v14, %v429_v16  ;;  %v417_v22 = vadd.f32 %v416_v20, %v288_v18  ;;  %v595_v15 = vpop.permute.xlu0 %594 }
 0x1df   :  { %v432_v23 = vmax.f32 %v422_v19, 0.0 }
 0x1e0   :  { %v431_v24 = vmax.f32 %v417_v22, 0.0  ;;  %2041 = vmatprep.subr.bf16.mxu0 %v2040_v21 }
 0x1e1   :  { %2043 = vmatpush3.bf16.msra.mxu0 %v2040_v21 }
 0x1e2   :  { %v2044_v25 = vpack.c.bf16 %v432_v23, %v431_v24  ;;  %v1629_v23 = vld [vmem:[%s2699_s4 + $0x48] sm:$0xff]  ;;  %v1630_v24 = vld [vmem:[%s2699_s4 + $0x50] sm:$0xff] }
 0x1e4   :  { %2045 = vmatprep.subr.bf16.mxu0 %v2044_v25 }
 0x1e5   :  { %2047 = vmatpush3.bf16.msra.mxu0 %v2044_v25  ;;  %v1631_v25 = vld [vmem:[%s2699_s4 + $0x58] sm:$0xff] }
 0x1e8   :  { %1882 = vmatmul.mubr.msk.f32.vlgmr.msra.gmra.mrb[8].mxu0 %vm295_vm6, %v434_v26  ;;  %v1632_v26 = vld [vmem:[%s2699_s4 + $0x60] sm:$0xff] }
 0x1e9   :  { %1888 = vmatprep.mubr.msk.f32.mxu0 %vm97_vm2, %v1603_v27  ;;  %v1633_v27 = vld [vmem:[%s2699_s4 + $0x68] sm:$0xff] }
 0x2bb   :  { %v1883_v29 = vpop.f32.mrb[8].mxu0 }
 0x2bc   :  { %v2494_v30 = vadd.f32 %v1883_v29, %v445_v28  ;;  %v519_v31 = vpop.f32.mrb[9].mxu0  ;;  %v1634_v28 = vld [vmem:[%s2699_s4 + $0x70] sm:$0xff]  ;;  %v1635_v29 = vld [vmem:[%s2699_s4 + $0x78] sm:$0xff] }
 0x2bd   :  { %v520_v35 = vadd.f32 %v519_v31, %v440_v34  ;;  %v1652_v31 = vld [vmem:[%s2701_s6 + $0x10] sm:$0xff] }
 0x2be   :  { %v529_v32 = vsub.f32 0.0, %v2494_v30 }
 0x2bf   :  { %v528_v36 = vsub.f32 %v2247_v3, %v520_v35  ;;  %v1605_v3 = vld [vmem:[%s2697_s2 + $0x50] sm:$0xff] }
 0x2c0   :  { %v530_v33 = vmul.f32 1.442695, %v529_v32  ;;  %v768_v32 = vpop.permute.xlu1 %767 }
 0x2c2   :  { %2130 = vpow2.f32 %v530_v33  ;;  %v763_v33 = vpop.permute.xlu0 %762 }
 0x2c4   :  { %v778_v34 = vpop.permute.xlu1 %777 }
 0x2cc   :  { %v2131_v37 = vpop.eup %2130 }
 0x2cd   :  { %v2498_v38 = vmul.f32 %v2131_v37, %v528_v36  ;;  %v773_v36 = vpop.permute.xlu0 %772 }
 0x2cf   :  { %541 = vst.msk [vmem:[#allocation2] sm:$0xff] %vm37_vm1, %v2498_v38 }
 0x2d1   :  { %v783_v48 = vpop.permute.xlu0 %782 }
 0x2d6   :  { %v551_v40 = vld [vmem:[#allocation2] sm:$0xff] }
 0x2d7   :  { %v2048_v41 = vpack.c.bf16 %v552_v39, %v551_v40 }
 0x2d9   :  { %2050 = vmatprep.subr.msk.bf16.mxu0 %vm2270_vm5, %v2048_v41 }
 0x2da   :  { %2053 = vmatpush3.bf16.msk.msra.mxu0 %vm2270_vm5, %v2048_v41 }
 0x2dd   :  { %1889 = vmatmul.mubr.msk.f32.vlgmr.msra.gmra.mrb[10].mxu0 %vm97_vm2, %v1604_v42 }
 0x2de   :  { %1891 = vmatprep.mubr.msk.f32.mxu0 %vm97_vm2, %v1605_v3 }
 0x2e1   :  { %1892 = vmatmul.mubr.msk.f32.gmra.mrb[12].mxu0 %vm97_vm2, %v1606_v43 }
 0x2e2   :  { %1894 = vmatprep.mubr.msk.f32.mxu0 %vm97_vm2, %v1607_v44 }
 0x2e5   :  { %1895 = vmatmul.mubr.msk.f32.gmra.mrb[14].mxu0 %vm97_vm2, %v1608_v45  ;;  %v788_v45 = vpop.permute.xlu1 %787 }
 0x2e6   :  { %1897 = vmatprep.mubr.msk.f32.mxu0 %vm97_vm2, %v1609_v46 }
 0x2e9   :  { %1898 = vmatmul.mubr.msk.f32.gmra.mrb[16].mxu0 %vm97_vm2, %v1610_v47 }
 0x2ea   :  { %1944 = vmatprep.mubr.msk.f32.mxu0 %vm295_vm6, %v1652_v31 }
 0x3b0   :  { %v1890_v52 = vpop.f32.mrb[10].mxu0 }
 0x3b1   :  { %v701_v54 = vadd.f32 %v1890_v52, %v570_v49  ;;  %v695_v55 = vpop.f32.mrb[11].mxu0 }
 0x3b2   :  { %v696_v56 = vadd.f32 %v695_v55, %v565_v50 }
 0x3b3   :  { %v735_v57 = vmax.f32 %v701_v54, 0.0 }
 0x3b4   :  { %v734_v58 = vmax.f32 %v696_v56, 0.0  ;;  %v1893_v59 = vpop.f32.mrb[12].mxu0 }
 0x3b5   :  { %v711_v60 = vadd.f32 %v1893_v59, %v580_v51  ;;  %v705_v61 = vpop.f32.mrb[13].mxu0 }
 0x3b6   :  { %v2054_v63 = vpack.c.bf16 %v735_v57, %v734_v58  ;;  %v706_v0 = vadd.f32 %v705_v61, %v575_v53  ;;  %v798_v57 = vpop.permute.xlu1 %797 }
 0x3b7   :  { %v737_v2 = vmax.f32 %v711_v60, 0.0  ;;  %v793_v60 = vpop.permute.xlu0 %792 }
 0x3b8   :  { %v736_v4 = vmax.f32 %v706_v0, 0.0  ;;  %v1896_v5 = vpop.f32.mrb[14].mxu0  ;;  %2055 = vmatprep.subr.bf16.mxu1 %v2054_v63 }
 0x3b9   :  { %v721_v6 = vadd.f32 %v1896_v5, %v590_v62  ;;  %v715_v7 = vpop.f32.mrb[15].mxu0  ;;  %2057 = vmatpush3.bf16.msra.mxu1 %v2054_v63  ;;  %v1653_v5 = vld [vmem:[%s2701_s6 + $0x18] sm:$0xff] }
 0x3ba   :  { %v2058_v8 = vpack.c.bf16 %v737_v2, %v736_v4  ;;  %v716_v9 = vadd.f32 %v715_v7, %v585_v1  ;;  %v533_v7 = vsel %vm37_vm1, %v2494_v30, 0.0 }
 0x3bb   :  { %v739_v10 = vmax.f32 %v721_v6, 0.0  ;;  %v1658_v6 = vld [vmem:[%s2697_s2 + $0x80] sm:$0xff] }
 0x3bc   :  { %v738_v13 = vmax.f32 %v716_v9, 0.0  ;;  %v1899_v14 = vpop.f32.mrb[16].mxu0  ;;  %2059 = vmatprep.subr.bf16.mxu1 %v2058_v8 }
 0x3bd   :  { %v731_v16 = vadd.f32 %v1899_v14, %v600_v11  ;;  %v725_v17 = vpop.f32.mrb[17].mxu0  ;;  %2061 = vmatpush3.bf16.msra.mxu1 %v2058_v8  ;;  %v534_v8 = vrot.slane %v533_v7, 4 }
 0x3be   :  { %v2062_v18 = vpack.c.bf16 %v739_v10, %v738_v13  ;;  %v726_v19 = vadd.f32 %v725_v17, %v595_v15  ;;  %v951_v10 = vpop.permute.xlu0 %950 }
 0x3bf   :  { %v741_v20 = vmax.f32 %v731_v16, 0.0  ;;  %v535_v9 = vadd.f32 %v534_v8, %v533_v7 }
 0x3c0   :  { %v740_v21 = vmax.f32 %v726_v19, 0.0  ;;  %2063 = vmatprep.subr.bf16.mxu1 %v2062_v18 }
 0x3c1   :  { %2065 = vmatpush3.bf16.msra.mxu1 %v2062_v18  ;;  %v536_v15 = vrot.slane %v535_v9, 2 }
 0x3c2   :  { %v2066_v22 = vpack.c.bf16 %v741_v20, %v740_v21 }
 0x3c3   :  { %v537_v20 = vadd.f32 %v536_v15, %v535_v9 }
 0x3c4   :  { %2067 = vmatprep.subr.bf16.mxu1 %v2066_v22 }
 0x3c5   :  { %2069 = vmatpush3.bf16.msra.mxu1 %v2066_v22 }
 0x3c8   :  { %1917 = vmatmul.mubr.msk.f32.vlgmr.msra.gmra.mrb[8].mxu1 %vm295_vm6, %v1629_v23  ;;  %v538_v23 = vrot.slane %v537_v20, 1 }
 0x3c9   :  { %1919 = vmatprep.mubr.msk.f32.mxu1 %vm295_vm6, %v1630_v24 }
 0x3cc   :  { %1920 = vmatmul.mubr.msk.f32.gmra.mrb[10].mxu1 %vm295_vm6, %v1631_v25  ;;  %v946_v25 = vpop.permute.xlu1 %945 }
 0x3cd   :  { %1922 = vmatprep.mubr.msk.f32.mxu1 %vm295_vm6, %v1632_v26 }
 0x3d0   :  { %1923 = vmatmul.mubr.msk.f32.gmra.mrb[12].mxu1 %vm295_vm6, %v1633_v27  ;;  %v539_v27 = vadd.f32 %v538_v23, %v537_v20  ;;  %v1687_v20 = vld [vmem:[%s2699_s4 + $0xa0] sm:$0xff]  ;;  %v1690_v23 = vld [vmem:[%s2699_s4 + $0xb8] sm:$0xff] }
 0x3d1   :  { %1925 = vmatprep.mubr.msk.f32.mxu1 %vm295_vm6, %v1634_v28 }
 0x3d4   :  { %1926 = vmatmul.mubr.msk.f32.gmra.mrb[14].mxu1 %vm295_vm6, %v1635_v29 }
 0x49b   :  { %v1918_v35 = vpop.f32.mrb[8].mxu1 }
 0x49c   :  { %v896_v37 = vadd.f32 %v1918_v35, %v768_v32  ;;  %v890_v39 = vpop.f32.mrb[9].mxu1 }
 0x49d   :  { %v891_v40 = vadd.f32 %v890_v39, %v763_v33  ;;  %v1661_v39 = vld [vmem:[%s2697_s2 + $0x98] sm:$0xff] }
 0x49e   :  { %v930_v41 = vmax.f32 %v896_v37, 0.0  ;;  %v1660_v37 = vld [vmem:[%s2697_s2 + $0x90] sm:$0xff] }
 0x49f   :  { %v929_v42 = vmax.f32 %v891_v40, 0.0  ;;  %v1921_v3 = vpop.f32.mrb[10].mxu1  ;;  %v1663_v40 = vld [vmem:[%s2697_s2 + $0xa8] sm:$0xff] }
 0x4a0   :  { %v906_v43 = vadd.f32 %v1921_v3, %v778_v34  ;;  %v900_v44 = vpop.f32.mrb[11].mxu1  ;;  %v1058_v34 = vld [vmem:[#allocation2 + $0x8] sm:$0xf]  ;;  %v1683_v3 = vld [vmem:[%s2699_s4 + $0x80] sm:$0xff] }
 0x4a1   :  { %v2070_v46 = vpack.c.bf16 %v930_v41, %v929_v42  ;;  %v901_v47 = vadd.f32 %v900_v44, %v773_v36  ;;  %v1664_v41 = vld [vmem:[%s2697_s2 + $0xb0] sm:$0xff]  ;;  %v1665_v42 = vld [vmem:[%s2697_s2 + $0xb8] sm:$0xff]  ;;  %1979 = vmatprep.mubr.msk.f32.mxu1 %vm295_vm6, %v1683_v3  ;;  %v1071_v44 = vpop.permute.xlu0 %1070 }
 0x4a2   :  { %v932_v49 = vmax.f32 %v906_v43, 0.0  ;;  %v1076_v43 = vpop.permute.xlu1 %1075 }
 0x4a3   :  { %v931_v50 = vmax.f32 %v901_v47, 0.0  ;;  %v1924_v51 = vpop.f32.mrb[12].mxu1  ;;  %2071 = vmatprep.subr.bf16.mxu0 %v2070_v46 }
 0x4a4   :  { %v916_v52 = vadd.f32 %v1924_v51, %v788_v45  ;;  %v910_v53 = vpop.f32.mrb[13].mxu1  ;;  %2073 = vmatpush3.bf16.msra.mxu0 %v2070_v46 }
 0x4a5   :  { %v2074_v54 = vpack.c.bf16 %v932_v49, %v931_v50  ;;  %v911_v55 = vadd.f32 %v910_v53, %v783_v48  ;;  %v1081_v47 = vpop.permute.xlu0 %1080 }
 0x4a6   :  { %v934_v56 = vmax.f32 %v916_v52, 0.0  ;;  %v1086_v45 = vpop.permute.xlu1 %1085 }
 0x4a7   :  { %v933_v58 = vmax.f32 %v911_v55, 0.0  ;;  %v1927_v59 = vpop.f32.mrb[14].mxu1  ;;  %2075 = vmatprep.subr.bf16.mxu0 %v2074_v54 }
 0x4a8   :  { %v926_v61 = vadd.f32 %v1927_v59, %v798_v57  ;;  %v920_v62 = vpop.f32.mrb[15].mxu1  ;;  %2077 = vmatpush3.bf16.msra.mxu0 %v2074_v54 }
 0x4a9   :  { %v2078_v63 = vpack.c.bf16 %v934_v56, %v933_v58  ;;  %v921_v0 = vadd.f32 %v920_v62, %v793_v60  ;;  %v1091_v59 = vpop.permute.xlu0 %1090 }
 0x4aa   :  { %v936_v1 = vmax.f32 %v926_v61, 0.0  ;;  %v1096_v56 = vpop.permute.xlu1 %1095 }
 0x4ab   :  { %v935_v2 = vmax.f32 %v921_v0, 0.0  ;;  %2079 = vmatprep.subr.bf16.mxu0 %v2078_v63 }
 0x4ac   :  { %2081 = vmatpush3.bf16.msra.mxu0 %v2078_v63 }
 0x4ad   :  { %v2082_v4 = vpack.c.bf16 %v936_v1, %v935_v2  ;;  %v1101_v8 = vpop.permute.xlu0 %1100 }
 0x4af   :  { %2083 = vmatprep.subr.bf16.mxu0 %v2082_v4 }
 0x4b0   :  { %2085 = vmatpush3.bf16.msra.mxu0 %v2082_v4 }
 0x4b3   :  { %1945 = vmatmul.mubr.msk.f32.vlgmr.msra.gmra.mrb[18].mxu0 %vm295_vm6, %v1653_v5  ;;  %v1106_v5 = vpop.permute.xlu1 %1105 }
 0x4b4   :  { %1951 = vmatprep.mubr.msk.f32.mxu0 %vm97_vm2, %v1658_v6 }
 0x586   :  { %v1946_v11 = vpop.f32.mrb[18].mxu0 }
 0x587   :  { %v1031_v13 = vadd.f32 %v1946_v11, %v951_v10  ;;  %v1025_v14 = vpop.f32.mrb[19].mxu0 }
 0x588   :  { %v1026_v26 = vadd.f32 %v1025_v14, %v946_v25  ;;  %v1274_v25 = vpop.permute.xlu1 %1273 }
 0x589   :  { %v1035_v16 = vsub.f32 0.0, %v1031_v13  ;;  %v1039_v17 = vsel %vm37_vm1, %v1031_v13, 0.0 }
 0x58a   :  { %v1040_v18 = vrot.slane %v1039_v17, 4  ;;  %v1034_v29 = vsub.f32 %v2498_v38, %v1026_v26  ;;  %v1659_v38 = vld [vmem:[%s2697_s2 + $0x88] sm:$0xff] }
 0x58b   :  { %v1036_v19 = vmul.f32 1.442695, %v1035_v16 }
 0x58c   :  { %v1041_v21 = vadd.f32 %v1040_v18, %v1039_v17  ;;  %v1684_v17 = vld [vmem:[%s2699_s4 + $0x88] sm:$0xff]  ;;  %v1685_v18 = vld [vmem:[%s2699_s4 + $0x90] sm:$0xff]  ;;  %v1284_v26 = vpop.permute.xlu1 %1283 }
 0x58d   :  { %2132 = vpow2.f32 %v1036_v19  ;;  %v1686_v19 = vld [vmem:[%s2699_s4 + $0x98] sm:$0xff] }
 0x58e   :  { %v1042_v22 = vrot.slane %v1041_v21, 2 }
 0x590   :  { %v1043_v24 = vadd.f32 %v1042_v22, %v1041_v21  ;;  %v1688_v21 = vld [vmem:[%s2699_s4 + $0xa8] sm:$0xff]  ;;  %v1689_v22 = vld [vmem:[%s2699_s4 + $0xb0] sm:$0xff] }
 0x592   :  { %v1044_v30 = vrot.slane %v1043_v24, 1 }
 0x594   :  { %v1045_v28 = vadd.f32 %v1044_v30, %v1043_v24  ;;  %v1707_v24 = vld [vmem:[%s2701_s6 + $0x20] sm:$0xff]  ;;  %v1269_v30 = vpop.permute.xlu0 %1268 }
 0x596   :  { %v2582_v31 = vadd.f32 %v1045_v28, %v539_v27 }
 0x597   :  { %v2133_v32 = vpop.eup %2132 }
 0x598   :  { %v2584_v33 = vmul.f32 %v2133_v32, %v1034_v29  ;;  %v1279_v28 = vpop.permute.xlu0 %1278 }
 0x59a   :  { %1047 = vst.msk [vmem:[#allocation2] sm:$0xff] %vm37_vm1, %v2584_v33 }
 0x5a1   :  { %v1057_v35 = vld [vmem:[#allocation2] sm:$0xff] }
 0x5a2   :  { %v2086_v36 = vpack.c.bf16 %v1058_v34, %v1057_v35 }
 0x5a4   :  { %2088 = vmatprep.subr.msk.bf16.mxu0 %vm2270_vm5, %v2086_v36 }
 0x5a5   :  { %2091 = vmatpush3.bf16.msk.msra.mxu0 %vm2270_vm5, %v2086_v36 }
 0x5a8   :  { %1952 = vmatmul.mubr.msk.f32.vlgmr.msra.gmra.mrb[20].mxu0 %vm97_vm2, %v1659_v38 }
 0x5a9   :  { %1954 = vmatprep.mubr.msk.f32.mxu0 %vm97_vm2, %v1660_v37 }
 0x5ac   :  { %1955 = vmatmul.mubr.msk.f32.gmra.mrb[22].mxu0 %vm97_vm2, %v1661_v39 }
 0x5ad   :  { %1957 = vmatprep.mubr.msk.f32.mxu0 %vm97_vm2, %v1662_v12  ;;  %v1294_v12 = vpop.permute.xlu1 %1293 }
 0x5b0   :  { %1958 = vmatmul.mubr.msk.f32.gmra.mrb[24].mxu0 %vm97_vm2, %v1663_v40 }
 0x5b1   :  { %1960 = vmatprep.mubr.msk.f32.mxu0 %vm97_vm2, %v1664_v41 }
 0x5b4   :  { %1961 = vmatmul.mubr.msk.f32.gmra.mrb[26].mxu0 %vm97_vm2, %v1665_v42  ;;  %v1289_v42 = vpop.permute.xlu0 %1288 }
 0x5b5   :  { %2007 = vmatprep.mubr.msk.f32.mxu0 %vm295_vm6, %v1707_v24 }
 0x67b   :  { %v1953_v46 = vpop.f32.mrb[20].mxu0 }
 0x67c   :  { %v1207_v48 = vadd.f32 %v1953_v46, %v1076_v43  ;;  %v1201_v49 = vpop.f32.mrb[21].mxu0 }
 0x67d   :  { %v1202_v50 = vadd.f32 %v1201_v49, %v1071_v44 }
 0x67e   :  { %v1241_v51 = vmax.f32 %v1207_v48, 0.0 }
 0x67f   :  { %v1240_v52 = vmax.f32 %v1202_v50, 0.0  ;;  %v1956_v53 = vpop.f32.mrb[22].mxu0  ;;  %v1304_v50 = vpop.permute.xlu1 %1303 }
 0x680   :  { %v1217_v54 = vadd.f32 %v1956_v53, %v1086_v45  ;;  %v1211_v55 = vpop.f32.mrb[23].mxu0  ;;  %v1299_v53 = vpop.permute.xlu0 %1298 }
 0x681   :  { %v2092_v57 = vpack.c.bf16 %v1241_v51, %v1240_v52  ;;  %v1212_v58 = vadd.f32 %v1211_v55, %v1081_v47 }
 0x682   :  { %v1243_v60 = vmax.f32 %v1217_v54, 0.0 }
 0x683   :  { %v1242_v61 = vmax.f32 %v1212_v58, 0.0  ;;  %v1959_v62 = vpop.f32.mrb[24].mxu0  ;;  %2093 = vmatprep.subr.bf16.mxu1 %v2092_v57 }
 0x684   :  { %v1227_v63 = vadd.f32 %v1959_v62, %v1096_v56  ;;  %v1221_v0 = vpop.f32.mrb[25].mxu0  ;;  %2095 = vmatpush3.bf16.msra.mxu1 %v2092_v57  ;;  %v1457_v62 = vpop.permute.xlu0 %1456 }
 0x685   :  { %v2096_v1 = vpack.c.bf16 %v1243_v60, %v1242_v61  ;;  %v1222_v2 = vadd.f32 %v1221_v0, %v1091_v59  ;;  %v1708_v61 = vld [vmem:[%s2701_s6 + $0x28] sm:$0xff]  ;;  %s1572_s6 = sshll.u32 %s2186_s29, 4  ;;  %s1573_s6 = int_to_ptr.vmem [resolvable:$true] %s1572_s6 }
 0x686   :  { %v1245_v4 = vmax.f32 %v1227_v63, 0.0  ;;  %s2136_s10 = scalar_lea.vmem %s1573_s6, 16  ;;  %s2140_s11 = scalar_lea.vmem %s1573_s6, 32 }
 0x687   :  { %v1244_v6 = vmax.f32 %v1222_v2, 0.0  ;;  %v1962_v7 = vpop.f32.mrb[26].mxu0  ;;  %2097 = vmatprep.subr.bf16.mxu1 %v2096_v1  ;;  %p2137_p0 = scmp.ne.s32.totalorder %s1573_s6, %s2136_s10  ;;  %p2141_p1 = scmp.lt.s32.totalorder %s1573_s6, %s1573_s6 }
 0x688   :  { %v1237_v9 = vadd.f32 %v1962_v7, %v1106_v5  ;;  %v1231_v10 = vpop.f32.mrb[27].mxu0  ;;  %2099 = vmatpush3.bf16.msra.mxu1 %v2096_v1  ;;  %p2142_p2 = scmp.lt.s32.totalorder %s2140_s11, %s2136_s10 }
 0x689   :  { %v2100_v11 = vpack.c.bf16 %v1245_v4, %v1244_v6  ;;  %v1232_v13 = vadd.f32 %v1231_v10, %v1101_v8  ;;  %v1452_v10 = vpop.permute.xlu1 %1451 }
 0x68a   :  { %v1247_v14 = vmax.f32 %v1237_v9, 0.0  ;;  %p2143_p3 = por %p2142_p2, %p2141_p1 }
 0x68b   :  { %v1246_v15 = vmax.f32 %v1232_v13, 0.0  ;;  %2101 = vmatprep.subr.bf16.mxu1 %v2100_v11 }
 0x68c   :  { %2103 = vmatpush3.bf16.msra.mxu1 %v2100_v11  ;;  %p2144_p4 = pnand %p2143_p3, %p2137_p0 }
 0x68d   :  { %v2104_v16 = vpack.c.bf16 %v1247_v14, %v1246_v15 }
 0x68f   :  { %2105 = vmatprep.subr.bf16.mxu1 %v2104_v16 }
 0x690   :  { %2107 = vmatpush3.bf16.msra.mxu1 %v2104_v16 }
 0x693   :  { %1980 = vmatmul.mubr.msk.f32.vlgmr.msra.gmra.mrb[16].mxu1 %vm295_vm6, %v1684_v17 }
 0x694   :  { %1982 = vmatprep.mubr.msk.f32.mxu1 %vm295_vm6, %v1685_v18 }
 0x697   :  { %1983 = vmatmul.mubr.msk.f32.gmra.mrb[18].mxu1 %vm295_vm6, %v1686_v19 }
 0x698   :  { %1985 = vmatprep.mubr.msk.f32.mxu1 %vm295_vm6, %v1687_v20 }
 0x69b   :  { %1986 = vmatmul.mubr.msk.f32.gmra.mrb[20].mxu1 %vm295_vm6, %v1688_v21 }
 0x69c   :  { %1988 = vmatprep.mubr.msk.f32.mxu1 %vm295_vm6, %v1689_v22 }
 0x69f   :  { %1989 = vmatmul.mubr.msk.f32.gmra.mrb[22].mxu1 %vm295_vm6, %v1690_v23 }
 0x766   :  { %v1981_v27 = vpop.f32.mrb[16].mxu1 }
 0x767   :  { %v1402_v29 = vadd.f32 %v1981_v27, %v1274_v25  ;;  %v1396_v32 = vpop.f32.mrb[17].mxu1 }
 0x768   :  { %v1397_v34 = vadd.f32 %v1396_v32, %v1269_v30 }
 0x769   :  { %v1436_v35 = vmax.f32 %v1402_v29, 0.0 }
 0x76a   :  { %v1435_v36 = vmax.f32 %v1397_v34, 0.0  ;;  %v1984_v38 = vpop.f32.mrb[18].mxu1 }
 0x76b   :  { %v1412_v37 = vadd.f32 %v1984_v38, %v1284_v26  ;;  %v1406_v39 = vpop.f32.mrb[19].mxu1 }
 0x76c   :  { %v2108_v40 = vpack.c.bf16 %v1436_v35, %v1435_v36  ;;  %v1407_v41 = vadd.f32 %v1406_v39, %v1279_v28 }
 0x76d   :  { %v1438_v3 = vmax.f32 %v1412_v37, 0.0 }
 0x76e   :  { %v1437_v43 = vmax.f32 %v1407_v41, 0.0  ;;  %v1987_v44 = vpop.f32.mrb[20].mxu1  ;;  %2109 = vmatprep.subr.bf16.mxu0 %v2108_v40 }
 0x76f   :  { %v1422_v45 = vadd.f32 %v1987_v44, %v1294_v12  ;;  %v1416_v46 = vpop.f32.mrb[21].mxu1  ;;  %2111 = vmatpush3.bf16.msra.mxu0 %v2108_v40 }
 0x770   :  { %v2112_v47 = vpack.c.bf16 %v1438_v3, %v1437_v43  ;;  %v1417_v48 = vadd.f32 %v1416_v46, %v1289_v42 }
 0x771   :  { %v1440_v49 = vmax.f32 %v1422_v45, 0.0 }
 0x772   :  { %v1439_v51 = vmax.f32 %v1417_v48, 0.0  ;;  %v1990_v52 = vpop.f32.mrb[22].mxu1  ;;  %2113 = vmatprep.subr.bf16.mxu0 %v2112_v47 }
 0x773   :  { %v1432_v54 = vadd.f32 %v1990_v52, %v1304_v50  ;;  %v1426_v55 = vpop.f32.mrb[23].mxu1  ;;  %2115 = vmatpush3.bf16.msra.mxu0 %v2112_v47 }
 0x774   :  { %v2116_v56 = vpack.c.bf16 %v1440_v49, %v1439_v51  ;;  %v1427_v57 = vadd.f32 %v1426_v55, %v1299_v53 }
 0x775   :  { %v1442_v58 = vmax.f32 %v1432_v54, 0.0 }
 0x776   :  { %v1441_v59 = vmax.f32 %v1427_v57, 0.0  ;;  %2117 = vmatprep.subr.bf16.mxu0 %v2116_v56 }
 0x777   :  { %2119 = vmatpush3.bf16.msra.mxu0 %v2116_v56 }
 0x778   :  { %v2120_v60 = vpack.c.bf16 %v1442_v58, %v1441_v59 }
 0x77a   :  { %2121 = vmatprep.subr.bf16.mxu0 %v2120_v60 }
 0x77b   :  { %2123 = vmatpush3.bf16.msra.mxu0 %v2120_v60 }
 0x77e   :  { %2008 = vmatmul.mubr.msk.f32.vlgmr.msra.gmra.mrb[28].mxu0 %vm295_vm6, %v1708_v61 }
 0x851   :  { %v2009_v63 = vpop.f32.mrb[28].mxu0 }
 0x852   :  { %v1537_v0 = vadd.f32 %v2009_v63, %v1457_v62  ;;  %v1531_v1 = vpop.f32.mrb[29].mxu0 }
 0x853   :  { %v1532_v13 = vadd.f32 %v1531_v1, %v1452_v10 }
 0x854   :  { %v1541_v2 = vsub.f32 0.0, %v1537_v0  ;;  %v1545_v4 = vsel %vm37_vm1, %v1537_v0, 0.0 }
 0x855   :  { %v1546_v5 = vrot.slane %v1545_v4, 4  ;;  %v1540_v15 = vsub.f32 %v2584_v33, %v1532_v13 }
 0x856   :  { %v1542_v6 = vmul.f32 1.442695, %v1541_v2 }
 0x857   :  { %v1547_v7 = vadd.f32 %v1546_v5, %v1545_v4 }
 0x858   :  { %2134 = vpow2.f32 %v1542_v6 }
 0x859   :  { %v1548_v8 = vrot.slane %v1547_v7, 2 }
 0x85b   :  { %v1549_v9 = vadd.f32 %v1548_v8, %v1547_v7 }
 0x85d   :  { %v1550_v11 = vrot.slane %v1549_v9, 1 }
 0x85f   :  { %v1551_v14 = vadd.f32 %v1550_v11, %v1549_v9 }
 0x861   :  { %v1552_v16 = vadd.f32 %v1551_v14, %v2582_v31 }
 0x862   :  { %v2135_v17 = vpop.eup %2134 }
 0x863   :  { %v1544_v18 = vmul.f32 %v2135_v17, %v1540_v15  ;;  %1555 = vst.msk [vmem:[#allocation5] sm:$0x1] %vm1554_vm7, %v1552_v16 }
 0x864   :  { %2147 = shalt.err (!%p2144_p4)
}
 0x865   :  { %s2148_s14 = scalar_lea.hbm %s2704_s9, 16 }
 0x866   :  { %p2149_p5 = scmp.ne.s32.totalorder %s2704_s9, %s2148_s14  ;;  %p2152_p6 = scmp.lt.u32.totalorder %s2148_s14, %s2704_s9 }
 0x868   :  { %p2154_p7 = pnand %p2152_p6, %p2149_p5 }
 0x86a   :  { %2157 = shalt.err (!%p2154_p7)
}
 0x86b   :  { %1575 = dma.vmem_to_hbm [thread:$0]  %s1573_s6, 16, %s2704_s9, [#allocation6]   ;;  %1553 = vst.msk [vmem:[#allocation3] sm:$0xff] %vm37_vm1, %v1544_v18 }
 0x86c   :  { %s2158_s20 = scalar_lea.vmem %s2663_s3, 128  ;;  %p2163_p9 = scmp.lt.s32.totalorder %s2663_s3, %s2663_s3 }
 0x86d   :  { %p2159_p8 = scmp.ne.s32.totalorder %s2663_s3, %s2158_s20  ;;  %p2164_p10 = scmp.lt.s32.totalorder %s2158_s20, %s2158_s20 }
 0x86f   :  { %p2165_p11 = por %p2164_p10, %p2163_p9 }
 0x871   :  { %p2166_p12 = pnand %p2165_p11, %p2159_p8 }
 0x873   :  { %2169 = shalt.err (!%p2166_p12)
}
 0x874   :  { %s2170_s5 = scalar_lea.hbm %s2703_s8, 128 }
 0x875   :  { %p2171_p13 = scmp.ne.s32.totalorder %s2703_s8, %s2170_s5  ;;  %p2174_p0 = scmp.lt.u32.totalorder %s2170_s5, %s2703_s8 }
 0x877   :  { %p2176_p1 = pnand %p2174_p0, %p2171_p13 }
 0x879   :  { %2179 = shalt.err (!%p2176_p1)
}
 0x87a   :  { %1565 = dma.vmem_to_hbm [thread:$0]  %s2663_s3, 128, %s2703_s8, [#allocation4]  }
 0x87b   :  { %2180 = dma.done.wait [#allocation4], 128  }
 0x87c   :  { %2181 = vsyncadd [#allocation4], 4294967168 }
 0x87d   :  { %2182 = dma.done.wait [#allocation6], 16  }
 0x87e   :  { %2183 = vsyncadd [#allocation6], 4294967280 }
 0x87f   :  { %1582 = vsyncpa [#allocation4], 1 }
 0x880   :  { %1583 = vsyncpa [#allocation6], 1 }

</bundles_post_ra>
